<compile_context>
chip_gen: v7x
topology: tpu7x:2x2x1
jax: 0.10.0
libtpu: 0.0.40
codegen_flags: <defaults>
</compile_context>

<pallas_src>
import functools

import jax
import jax.numpy as jnp
from jax.experimental import pallas as pl
from jax.experimental.pallas import tpu as pltpu


def _round_up(v, m):
    return ((v + m - 1) // m) * m


def _fused_mlp_kernel(x_ref, *rest, n_layers, relus):
    """rest = (w0_ref, b0_ref, ..., w{L-1}_ref, b{L-1}_ref, o_ref).

    x_ref : VMEM (TB, K0_pad) bf16        -- flattened, padded input activations
    wi_ref: VMEM (K_i_pad, N_i_pad) bf16  -- pre-transposed weight with the
                                             constant-d block already folded in
    bi_ref: VMEM (1, N_i_pad) f32         -- zero-padded bias row
    o_ref : VMEM (TB, N_last_pad) f32     -- lane-dense output block
    """
    wb_refs = rest[: 2 * n_layers]
    o_ref = rest[2 * n_layers]

    h = x_ref[...]                                        # bf16 activations
    for i in range(n_layers):
        w_ref = wb_refs[2 * i]
        b_ref = wb_refs[2 * i + 1]
        y = jnp.dot(h, w_ref[...], preferred_element_type=jnp.float32)  # MXU
        y = y + b_ref[...]                                # f32 epilogue
        if relus[i]:
            y = jnp.maximum(y, 0.0)
        h = y.astype(jnp.bfloat16) if i < n_layers - 1 else y
    o_ref[...] = h.astype(o_ref.dtype)


def prepare_params(params):
    """One-time parameter prep: transpose + fold diag block + pad + bf16 cast.

    params: list of (W (out,in) f32, b (out,) f32, d scalar, apply_relu).
    Returns (flat_wb, meta).
    """
    n_layers = len(params)
    relus, flat_wb = [], []
    in_features = params[0][0].shape[1]
    k_orig = in_features
    k_pad = _round_up(in_features, 128)

    for i, (w, b, d, apply_relu) in enumerate(params):
        out_f, in_f = w.shape
        assert in_f == k_orig, "layer widths must chain"
        # Required for the torch broadcast full_diag[:m,:m] = d*ones(out) to be
        # valid; it also guarantees min_dim == out_f.
        assert out_f <= in_f, "DiagDNN broadcast requires out <= in"
        md = min(out_f, in_f)
        relus.append(bool(apply_relu))
        n_pad = _round_up(out_f, 128)

        wt = jnp.transpose(w).astype(jnp.float32)                 # (in, out)
        # Fold the constant-d (md, md) block into the weight (f32, then bf16).
        wt = wt.at[:md, :md].add(jnp.asarray(d, jnp.float32))
        # Zero-pad: extra input rows (padded activations) and extra output
        # columns are provably inert (zero contribution, zero bias, relu(0)=0).
        wt = jnp.pad(wt, ((0, k_pad - in_f), (0, n_pad - out_f)))
        b2 = jnp.pad(b.astype(jnp.float32).reshape(1, out_f),
                     ((0, 0), (0, n_pad - out_f)))

        flat_wb += [wt.astype(jnp.bfloat16), b2]
        k_orig, k_pad = out_f, n_pad

    meta = dict(
        n_layers=n_layers,
        relus=tuple(relus),
        in_features=in_features,
        in_features_pad=_round_up(in_features, 128),
        n_out=params[-1][0].shape[0],
        n_out_pad=flat_wb[-2].shape[1],
    )
    return flat_wb, meta


def make_forward(meta):
    """Build a jitted forward: one fused Pallas kernel for the whole MLP."""
    kernel = functools.partial(
        _fused_mlp_kernel, n_layers=meta["n_layers"], relus=meta["relus"])

    def forward(x_nchw, flat_wb):
        B = x_nchw.shape[0]
        K0, K0p, Np = meta["in_features"], meta["in_features_pad"], meta["n_out_pad"]

        x = x_nchw.reshape(B, K0).astype(jnp.bfloat16)
        # Batch tile: bf16 LHS sublane granule is 16; tile rows at 256 once the
        # batch is large so v7x megacore can shard the grid and per-step VMEM
        # stays bounded.
        TB = _round_up(B, 16) if B <= 256 else 256
        B_pad = _round_up(B, TB)
        x = jnp.pad(x, ((0, B_pad - B), (0, K0p - K0)))

        in_specs = [pl.BlockSpec((TB, K0p), lambda i: (i, 0))]
        for arr in flat_wb:
            # Full-array blocks with a constant block index: DMA'd once,
            # resident across all batch-grid steps.
            in_specs.append(pl.BlockSpec(arr.shape, lambda i: (0, 0)))

        out_pad = pl.pallas_call(
            kernel,
            out_shape=jax.ShapeDtypeStruct((B_pad, Np), jnp.float32),
            grid=(B_pad // TB,),
            in_specs=in_specs,
            out_specs=pl.BlockSpec((TB, Np), lambda i: (i, 0)),
            compiler_params=pltpu.CompilerParams(
                dimension_semantics=("parallel",)),
        )(x, *flat_wb)
        return out_pad[:B, : meta["n_out"]]

    return jax.jit(forward)


# ----------------------------- references ----------------------------------


def diag_dnn_reference(x_nchw, params):
    """Exact f32 pure-JAX mirror of the PyTorch forward."""
    B = x_nchw.shape[0]
    x = x_nchw.reshape(B, -1)
    for (w, b, d, apply_relu) in params:
        full_diag = jnp.zeros_like(w)
        min_dim = min(w.shape)
        # torch: full_diag[:min,:min] = d * ones(out)  -> constant block fill
        full_diag = full_diag.at[:min_dim, :min_dim].set(
            jnp.broadcast_to(d * jnp.ones((w.shape[0],), w.dtype)[:min_dim],
                             (min_dim, min_dim)))
        x = x @ (w + full_diag).T + b
        if apply_relu:
            x = jnp.maximum(x, 0.0)
    return x


def diag_dnn_reference_matched(x_nchw, params):
    """Pure-JAX reference using the same folded-bf16-weight math as the kernel."""
    B = x_nchw.shape[0]
    h = x_nchw.reshape(B, -1).astype(jnp.bfloat16)
    y = None
    n_layers = len(params)
    for i, (w, b, d, apply_relu) in enumerate(params):
        md = min(w.shape)
        wt = jnp.transpose(w).astype(jnp.float32)
        wt = wt.at[:md, :md].add(jnp.asarray(d, jnp.float32))
        y = jnp.dot(h, wt.astype(jnp.bfloat16),
                    preferred_element_type=jnp.float32)
        y = y + b.astype(jnp.float32)
        if apply_relu:
            y = jnp.maximum(y, 0.0)
        h = y.astype(jnp.bfloat16) if i < n_layers - 1 else y
    return y


def make_params(key, hidden_widths, n_classes, in_features):
    """Deterministic synthetic weights matching DiagDNN's layer shapes."""
    widths = [in_features] + list(hidden_widths) + [n_classes]
    params = []
    n_layers = len(widths) - 1
    for i in range(n_layers):
        fan_in, fan_out = widths[i], widths[i + 1]
        key, kw, kb = jax.random.split(key, 3)
        bound = 1.0 / jnp.sqrt(fan_in)
        w = jax.random.uniform(kw, (fan_out, fan_in), jnp.float32, -bound, bound)
        b = jax.random.uniform(kb, (fan_out,), jnp.float32, -bound, bound)
        # torch init is 1e-5; use larger values here so the diag-block path is
        # actually exercised by the numerical check (d is a learned parameter).
        d = jnp.float32(0.05 + 0.01 * i)
        apply_relu = i < n_layers - 1          # ReLU after hidden layers only
        params.append((w, b, d, apply_relu))
    return params


if __name__ == "__main__":
    # cifar10 config: input (B, 3, 32, 32) flattened to (B, 3072).
    B = 2
    HIDDEN_LAYER_WIDTHS = [64, 32]
    N_CLASSES = 10
    IN_FEATURES = 32 * 32 * 3

    key = jax.random.PRNGKey(0)
    key, kx = jax.random.split(key)
    x = jax.random.normal(kx, (B, 3, 32, 32), jnp.float32)

    params = make_params(key, HIDDEN_LAYER_WIDTHS, N_CLASSES, IN_FEATURES)
    flat_wb, meta = prepare_params(params)     # one-time: fold d + transpose + bf16
    forward = make_forward(meta)

    out = forward(x, flat_wb)
    out = jax.block_until_ready(out)
    assert out.shape == (B, N_CLASSES), out.shape

    # Tight check: kernel matches an identically-quantized pure-JAX computation.
    ref_matched = diag_dnn_reference_matched(x, params)
    err_tight = float(jnp.max(jnp.abs(out - ref_matched)))
    assert jnp.allclose(out, ref_matched, atol=5e-3, rtol=5e-3), err_tight

    # Loose check: bf16 folded-weight kernel vs exact f32 PyTorch-equivalent math.
    ref_f32 = diag_dnn_reference(x, params)
    err_loose = float(jnp.max(jnp.abs(out - ref_f32)))
    assert jnp.allclose(out, ref_f32, atol=1e-1, rtol=1e-1), err_loose

    print("KERNEL_OK")
</pallas_src>

<mosaic_0001>
module attributes {stable_mosaic.version = 11 : i64} {
  func.func @_fused_mlp_kernel(%arg0: i32, %arg1: memref<16x3072xbf16, #tpu.memory_space<vmem>>, %arg2: memref<3072x128xbf16, #tpu.memory_space<vmem>>, %arg3: memref<1x128xf32, #tpu.memory_space<vmem>>, %arg4: memref<128x128xbf16, #tpu.memory_space<vmem>>, %arg5: memref<1x128xf32, #tpu.memory_space<vmem>>, %arg6: memref<128x128xbf16, #tpu.memory_space<vmem>>, %arg7: memref<1x128xf32, #tpu.memory_space<vmem>>, %arg8: memref<16x128xf32, #tpu.memory_space<vmem>>) attributes {dimension_semantics = [#tpu.dimension_semantics<parallel>], iteration_bounds = array<i64: 1>, scalar_prefetch = 0 : i64, scratch_operands = 0 : i64, tpu.core_type = #tpu.core_type<tc>, window_params = [{transform_indices = @transform_0, window_bounds = array<i64: 16, 3072>}, {pipeline_mode = #tpu.pipeline_mode<synchronous>, transform_indices = @transform_1, window_bounds = array<i64: 3072, 128>}, {pipeline_mode = #tpu.pipeline_mode<synchronous>, transform_indices = @transform_2, window_bounds = array<i64: 1, 128>}, {pipeline_mode = #tpu.pipeline_mode<synchronous>, transform_indices = @transform_3, window_bounds = array<i64: 128, 128>}, {pipeline_mode = #tpu.pipeline_mode<synchronous>, transform_indices = @transform_4, window_bounds = array<i64: 1, 128>}, {pipeline_mode = #tpu.pipeline_mode<synchronous>, transform_indices = @transform_5, window_bounds = array<i64: 128, 128>}, {pipeline_mode = #tpu.pipeline_mode<synchronous>, transform_indices = @transform_6, window_bounds = array<i64: 1, 128>}, {transform_indices = @transform_7, window_bounds = array<i64: 16, 128>}]} {
    %c0 = arith.constant 0 : index
    %c0_0 = arith.constant 0 : index
    %0 = vector.load %arg1[%c0, %c0_0] : memref<16x3072xbf16, #tpu.memory_space<vmem>>, vector<16x3072xbf16>
    %c0_1 = arith.constant 0 : index
    %c0_2 = arith.constant 0 : index
    %1 = vector.load %arg2[%c0_1, %c0_2] : memref<3072x128xbf16, #tpu.memory_space<vmem>>, vector<3072x128xbf16>
    %cst = arith.constant dense<0.000000e+00> : vector<16x128xf32>
    %2 = tpu.matmul %0, %1, %cst {dimension_numbers = #tpu.dot_dimension_numbers<[1], [0], [0], [1], [0, 0, 1, 1], [], []>} : vector<16x3072xbf16>, vector<3072x128xbf16>, vector<16x128xf32> -> vector<16x128xf32>
    %c0_3 = arith.constant 0 : index
    %c0_4 = arith.constant 0 : index
    %3 = vector.load %arg3[%c0_3, %c0_4] : memref<1x128xf32, #tpu.memory_space<vmem>>, vector<1x128xf32>
    %4 = vector.broadcast %3 : vector<1x128xf32> to vector<16x128xf32>
    %5 = arith.addf %2, %4 : vector<16x128xf32>
    %cst_5 = arith.constant 0.000000e+00 : f32
    %6 = vector.broadcast %cst_5 : f32 to vector<16x128xf32>
    %7 = arith.maximumf %5, %6 : vector<16x128xf32>
    %8 = arith.truncf %7 : vector<16x128xf32> to vector<16x128xbf16>
    %c0_6 = arith.constant 0 : index
    %c0_7 = arith.constant 0 : index
    %9 = vector.load %arg4[%c0_6, %c0_7] : memref<128x128xbf16, #tpu.memory_space<vmem>>, vector<128x128xbf16>
    %cst_8 = arith.constant dense<0.000000e+00> : vector<16x128xf32>
    %10 = tpu.matmul %8, %9, %cst_8 {dimension_numbers = #tpu.dot_dimension_numbers<[1], [0], [0], [1], [0, 0, 1, 1], [], []>} : vector<16x128xbf16>, vector<128x128xbf16>, vector<16x128xf32> -> vector<16x128xf32>
    %c0_9 = arith.constant 0 : index
    %c0_10 = arith.constant 0 : index
    %11 = vector.load %arg5[%c0_9, %c0_10] : memref<1x128xf32, #tpu.memory_space<vmem>>, vector<1x128xf32>
    %12 = vector.broadcast %11 : vector<1x128xf32> to vector<16x128xf32>
    %13 = arith.addf %10, %12 : vector<16x128xf32>
    %cst_11 = arith.constant 0.000000e+00 : f32
    %14 = vector.broadcast %cst_11 : f32 to vector<16x128xf32>
    %15 = arith.maximumf %13, %14 : vector<16x128xf32>
    %16 = arith.truncf %15 : vector<16x128xf32> to vector<16x128xbf16>
    %c0_12 = arith.constant 0 : index
    %c0_13 = arith.constant 0 : index
    %17 = vector.load %arg6[%c0_12, %c0_13] : memref<128x128xbf16, #tpu.memory_space<vmem>>, vector<128x128xbf16>
    %cst_14 = arith.constant dense<0.000000e+00> : vector<16x128xf32>
    %18 = tpu.matmul %16, %17, %cst_14 {dimension_numbers = #tpu.dot_dimension_numbers<[1], [0], [0], [1], [0, 0, 1, 1], [], []>} : vector<16x128xbf16>, vector<128x128xbf16>, vector<16x128xf32> -> vector<16x128xf32>
    %c0_15 = arith.constant 0 : index
    %c0_16 = arith.constant 0 : index
    %19 = vector.load %arg7[%c0_15, %c0_16] : memref<1x128xf32, #tpu.memory_space<vmem>>, vector<1x128xf32>
    %20 = vector.broadcast %19 : vector<1x128xf32> to vector<16x128xf32>
    %21 = arith.addf %18, %20 : vector<16x128xf32>
    %c0_17 = arith.constant 0 : index
    %c0_18 = arith.constant 0 : index
    %22 = vector.load %arg8[%c0_17, %c0_18] : memref<16x128xf32, #tpu.memory_space<vmem>>, vector<16x128xf32>
    tpu.vector_store %arg8[%c0_17, %c0_18], %21 {strides = array<i32>} : memref<16x128xf32, #tpu.memory_space<vmem>>, vector<16x128xf32>,
    return
  }
  func.func @transform_0(%arg0: i32) -> (i32, i32) {
    %c0_i32 = arith.constant 0 : i32
    %c0_i32_0 = arith.constant 0 : i32
    return %arg0, %c0_i32 : i32, i32
  }
  func.func @transform_1(%arg0: i32) -> (i32, i32) {
    %c0_i32 = arith.constant 0 : i32
    %c0_i32_0 = arith.constant 0 : i32
    %c0_i32_1 = arith.constant 0 : i32
    return %c0_i32, %c0_i32_0 : i32, i32
  }
  func.func @transform_2(%arg0: i32) -> (i32, i32) {
    %c0_i32 = arith.constant 0 : i32
    %c0_i32_0 = arith.constant 0 : i32
    %c0_i32_1 = arith.constant 0 : i32
    return %c0_i32, %c0_i32_0 : i32, i32
  }
  func.func @transform_3(%arg0: i32) -> (i32, i32) {
    %c0_i32 = arith.constant 0 : i32
    %c0_i32_0 = arith.constant 0 : i32
    %c0_i32_1 = arith.constant 0 : i32
    return %c0_i32, %c0_i32_0 : i32, i32
  }
  func.func @transform_4(%arg0: i32) -> (i32, i32) {
    %c0_i32 = arith.constant 0 : i32
    %c0_i32_0 = arith.constant 0 : i32
    %c0_i32_1 = arith.constant 0 : i32
    return %c0_i32, %c0_i32_0 : i32, i32
  }
  func.func @transform_5(%arg0: i32) -> (i32, i32) {
    %c0_i32 = arith.constant 0 : i32
    %c0_i32_0 = arith.constant 0 : i32
    %c0_i32_1 = arith.constant 0 : i32
    return %c0_i32, %c0_i32_0 : i32, i32
  }
  func.func @transform_6(%arg0: i32) -> (i32, i32) {
    %c0_i32 = arith.constant 0 : i32
    %c0_i32_0 = arith.constant 0 : i32
    %c0_i32_1 = arith.constant 0 : i32
    return %c0_i32, %c0_i32_0 : i32, i32
  }
  func.func @transform_7(%arg0: i32) -> (i32, i32) {
    %c0_i32 = arith.constant 0 : i32
    %c0_i32_0 = arith.constant 0 : i32
    return %arg0, %c0_i32 : i32, i32
  }
}

</mosaic_0001>

<bundles_post_ra>
// kernel: forward.1
= control target key start
LH: loop header
LB: loop body
LE: loop exit
PB: predicated region body
PF: predicated region fallthrough
CT: control target
= control target key end

     0   :  { %12 = vsyncpa [#allocation3], 0  ;;  %s3251_s24 = smov [#allocation2]   ;;  %s3461_s0 = inlined_call_operand.vmem [shape: bf16[16,3072], index: 0, kind: input, shape index: {}]   ;;  %s3462_s1 = inlined_call_operand.hbm [shape: bf16[3072,128], index: 1, kind: input, shape index: {}]   ;;  %s3463_s2 = inlined_call_operand.vmem [shape: f32[1,128], index: 2, kind: input, shape index: {}]   ;;  %s3464_s3 = inlined_call_operand.vmem [shape: bf16[128,128], index: 3, kind: input, shape index: {}]   ;;  %s3465_s4 = inlined_call_operand.vmem [shape: f32[1,128], index: 4, kind: input, shape index: {}]   ;;  %s3466_s5 = inlined_call_operand.vmem [shape: bf16[128,128], index: 5, kind: input, shape index: {}]   ;;  %s3467_s6 = inlined_call_operand.vmem [shape: f32[1,128], index: 6, kind: input, shape index: {}]   ;;  %s3468_s7 = inlined_call_operand.vmem [shape: f32[16,128], index: 7, kind: output, shape index: {}]  }
   0x1   :  { %s20_s25 = sshll.u32 %s3251_s24, 4  ;;  %s3227_s28 = scalar_lea.hbm %s3462_s1, 24576  ;;  %s21_s25 = int_to_ptr.vmem [resolvable:$true] %s20_s25 }
   0x2   :  { %p3228_p0 = scmp.ne.s32.totalorder %s3462_s1, %s3227_s28  ;;  %p3231_p1 = scmp.lt.u32.totalorder %s3227_s28, %s3462_s1 }
   0x4   :  { %p3233_p2 = pnand %p3231_p1, %p3228_p0 }
   0x6   :  { %3236 = shalt.err (!%p3233_p2)
}
   0x7   :  { %s3237_s10 = scalar_lea.vmem %s21_s25, 24576  ;;  %p3242_p4 = scmp.lt.s32.totalorder %s21_s25, %s21_s25 }
   0x8   :  { %p3238_p3 = scmp.ne.s32.totalorder %s21_s25, %s3237_s10  ;;  %p3243_p5 = scmp.lt.s32.totalorder %s3237_s10, %s3237_s10 }
   0xa   :  { %p3244_p6 = por %p3243_p5, %p3242_p4 }
   0xc   :  { %p3245_p7 = pnand %p3244_p6, %p3238_p3 }
   0xe   :  { %3248 = shalt.err (!%p3245_p7)
}
   0xf   :  { %s3252_s11 = smov 64   ;;  %s3253_s12 = smov 4  }
  0x10   :  { %26 = dma.hbm_to_vmem [thread:$0]  %s3462_s1, 24576, %s21_s25, [#allocation3], %s3252_s11, %s3252_s11, %s3253_s12  }
  0x11   :  { %3249 = dma.done.wait [#allocation3], 24576  }
  0x12   :  { %3250 = vsyncadd [#allocation3], 4294942720  ;;  %v3019_v0 = vld [vmem:[#allocation2 + $0x40] sm:$0xff]   ;;  %v3023_v4 = vld [vmem:[#allocation2 + $0x48] sm:$0xff]   ;;  %vm3255_vm0 = vmmov 0  }
  0x13   :  { %v3020_v1 = vld [vmem:[#allocation2 + $0xc0] sm:$0xff]   ;;  %2692 = vmatprep.subr.bf16.mxu0 %v3019_v0  ;;  %v3024_v5 = vld [vmem:[#allocation2 + $0xc8] sm:$0xff]   ;;  %v3027_v8 = vld [vmem:[#allocation2 + $0x50] sm:$0xff]  }
  0x14   :  { %v3021_v2 = vld [vmem:[#allocation2] sm:$0xff]   ;;  %2714 = vmatprep.subr.bf16.mxu1 %v3020_v1  ;;  %v3025_v6 = vld [vmem:[#allocation2 + $0x8] sm:$0xff]   ;;  %v3028_v9 = vld [vmem:[#allocation2 + $0xd0] sm:$0xff]  }
  0x15   :  { %v3022_v3 = vld [vmem:[#allocation2 + $0x80] sm:$0xff]   ;;  %2693 = vmatpush3.bf16.msra.mxu0 %v3021_v2  ;;  %v3026_v7 = vld [vmem:[#allocation2 + $0x88] sm:$0xff]   ;;  %v3029_v10 = vld [vmem:[#allocation2 + $0x10] sm:$0xff]  }
  0x16   :  { %2715 = vmatpush3.bf16.msra.mxu1 %v3022_v3  ;;  %2694 = vmatprep.subr.bf16.mxu0 %v3023_v4  ;;  %v3030_v11 = vld [vmem:[#allocation2 + $0x90] sm:$0xff]   ;;  %v3031_v12 = vld [vmem:[#allocation2 + $0x58] sm:$0xff]   ;;  %v3035_v16 = vld [vmem:[#allocation2 + $0x60] sm:$0xff]  }
  0x17   :  { %2716 = vmatprep.subr.bf16.mxu1 %v3024_v5  ;;  %v3032_v13 = vld [vmem:[#allocation2 + $0xd8] sm:$0xff]   ;;  %v3036_v17 = vld [vmem:[#allocation2 + $0xe0] sm:$0xff]   ;;  %v3039_v20 = vld [vmem:[#allocation2 + $0x68] sm:$0xff]  }
  0x18   :  { %v3033_v14 = vld [vmem:[#allocation2 + $0x18] sm:$0xff]   ;;  %v3037_v18 = vld [vmem:[#allocation2 + $0x20] sm:$0xff]   ;;  %v3040_v21 = vld [vmem:[#allocation2 + $0xe8] sm:$0xff]  }
  0x19   :  { %2695 = vmatpush3.bf16.msra.mxu0 %v3025_v6  ;;  %v3034_v15 = vld [vmem:[#allocation2 + $0x98] sm:$0xff]   ;;  %v3038_v19 = vld [vmem:[#allocation2 + $0xa0] sm:$0xff]   ;;  %v3041_v22 = vld [vmem:[#allocation2 + $0x28] sm:$0xff]  }
  0x1a   :  { %2717 = vmatpush3.bf16.msra.mxu1 %v3026_v7  ;;  %2696 = vmatprep.subr.bf16.mxu0 %v3027_v8  ;;  %v3042_v23 = vld [vmem:[#allocation2 + $0xa8] sm:$0xff]   ;;  %v3043_v24 = vld [vmem:[#allocation2 + $0x70] sm:$0xff]   ;;  %v3047_v28 = vld [vmem:[#allocation2 + $0x78] sm:$0xff]  }
  0x1b   :  { %2718 = vmatprep.subr.bf16.mxu1 %v3028_v9  ;;  %v3044_v25 = vld [vmem:[#allocation2 + $0xf0] sm:$0xff]   ;;  %v3048_v29 = vld [vmem:[#allocation2 + $0xf8] sm:$0xff]   ;;  %v41_v32 = vld [vmem:[%s3461_s0] sm:$0xff] }
  0x1c   :  { %v3045_v26 = vld [vmem:[#allocation2 + $0x30] sm:$0xff]   ;;  %v3049_v30 = vld [vmem:[#allocation2 + $0x38] sm:$0xff]   ;;  %v53_v33 = vld [vmem:[%s3461_s0 + $0x60] sm:$0xff] }
  0x1d   :  { %2697 = vmatpush3.bf16.msra.mxu0 %v3029_v10  ;;  %v3046_v27 = vld [vmem:[#allocation2 + $0xb0] sm:$0xff]   ;;  %v3050_v31 = vld [vmem:[#allocation2 + $0xb8] sm:$0xff]   ;;  %v42_v34 = vld [vmem:[%s3461_s0 + $0x8] sm:$0xff]  ;;  %v2458_v35 = vcombine.low %v41_v32, %v53_v33  ;;  %v2459_v36 = vcombine.high %v41_v32, %v53_v33 }
  0x1e   :  { %2719 = vmatpush3.bf16.msra.mxu1 %v3030_v11  ;;  %2698 = vmatprep.subr.bf16.mxu0 %v3031_v12  ;;  %v54_v37 = vld [vmem:[%s3461_s0 + $0x68] sm:$0xff]  ;;  %v3051_v40 = vld [vmem:[#allocation2 + $0x140] sm:$0xff]   ;;  %v3059_v48 = vld [vmem:[#allocation2 + $0x150] sm:$0xff]  }
  0x1f   :  { %2720 = vmatprep.subr.bf16.mxu1 %v3032_v13  ;;  %v2460_v38 = vcombine.low %v42_v34, %v54_v37  ;;  %v2461_v39 = vcombine.high %v42_v34, %v54_v37  ;;  %1760 = vmatprep.mubr.bf16.mxu0 %v2459_v36  ;;  %v3052_v41 = vld [vmem:[#allocation2 + $0x1c0] sm:$0xff]   ;;  %v3055_v44 = vld [vmem:[#allocation2 + $0x148] sm:$0xff]   ;;  %v3060_v49 = vld [vmem:[#allocation2 + $0x1d0] sm:$0xff]  }
  0x20   :  { %v3053_v42 = vld [vmem:[#allocation2 + $0x100] sm:$0xff]   ;;  %v3056_v45 = vld [vmem:[#allocation2 + $0x1c8] sm:$0xff]   ;;  %v3061_v50 = vld [vmem:[#allocation2 + $0x110] sm:$0xff]  }
  0x21   :  { %2699 = vmatpush3.bf16.msra.mxu0 %v3033_v14  ;;  %1801 = vmatprep.mubr.bf16.mxu1 %v2461_v39  ;;  %v3054_v43 = vld [vmem:[#allocation2 + $0x180] sm:$0xff]   ;;  %v3057_v46 = vld [vmem:[#allocation2 + $0x108] sm:$0xff]   ;;  %v3062_v51 = vld [vmem:[#allocation2 + $0x190] sm:$0xff]  }
  0x22   :  { %2721 = vmatpush3.bf16.msra.mxu1 %v3034_v15  ;;  %2700 = vmatprep.subr.bf16.mxu0 %v3035_v16  ;;  %v3058_v47 = vld [vmem:[#allocation2 + $0x188] sm:$0xff]   ;;  %v3063_v52 = vld [vmem:[#allocation2 + $0x158] sm:$0xff]   ;;  %v3067_v56 = vld [vmem:[#allocation2 + $0x160] sm:$0xff]  }
  0x23   :  { %2722 = vmatprep.subr.bf16.mxu1 %v3036_v17  ;;  %v3064_v53 = vld [vmem:[#allocation2 + $0x1d8] sm:$0xff]   ;;  %v3068_v57 = vld [vmem:[#allocation2 + $0x1e0] sm:$0xff]   ;;  %v3071_v60 = vld [vmem:[#allocation2 + $0x168] sm:$0xff]  }
  0x24   :  { %v3065_v54 = vld [vmem:[#allocation2 + $0x118] sm:$0xff]   ;;  %v3069_v58 = vld [vmem:[#allocation2 + $0x120] sm:$0xff]   ;;  %v3072_v61 = vld [vmem:[#allocation2 + $0x1e8] sm:$0xff]  }
  0x25   :  { %2701 = vmatpush3.bf16.msra.mxu0 %v3037_v18  ;;  %v3066_v55 = vld [vmem:[#allocation2 + $0x198] sm:$0xff]   ;;  %v3070_v59 = vld [vmem:[#allocation2 + $0x1a0] sm:$0xff]   ;;  %v3073_v62 = vld [vmem:[#allocation2 + $0x128] sm:$0xff]  }
  0x26   :  { %2723 = vmatpush3.bf16.msra.mxu1 %v3038_v19  ;;  %2702 = vmatprep.subr.bf16.mxu0 %v3039_v20  ;;  %v3074_v63 = vld [vmem:[#allocation2 + $0x1a8] sm:$0xff]   ;;  %v3075_v0 = vld [vmem:[#allocation2 + $0x170] sm:$0xff]   ;;  %v3079_v4 = vld [vmem:[#allocation2 + $0x178] sm:$0xff]  }
  0x27   :  { %2724 = vmatprep.subr.bf16.mxu1 %v3040_v21  ;;  %v3076_v1 = vld [vmem:[#allocation2 + $0x1f0] sm:$0xff]   ;;  %v3080_v5 = vld [vmem:[#allocation2 + $0x1f8] sm:$0xff]   ;;  %v3083_v16 = vld [vmem:[#allocation2 + $0x240] sm:$0xff]  }
  0x28   :  { %v3077_v2 = vld [vmem:[#allocation2 + $0x130] sm:$0xff]   ;;  %v3081_v6 = vld [vmem:[#allocation2 + $0x138] sm:$0xff]   ;;  %v3084_v17 = vld [vmem:[#allocation2 + $0x2c0] sm:$0xff]  }
  0x29   :  { %2703 = vmatpush3.bf16.msra.mxu0 %v3041_v22  ;;  %v3078_v3 = vld [vmem:[#allocation2 + $0x1b0] sm:$0xff]   ;;  %v3082_v7 = vld [vmem:[#allocation2 + $0x1b8] sm:$0xff]   ;;  %v3085_v18 = vld [vmem:[#allocation2 + $0x200] sm:$0xff]  }
  0x2a   :  { %2725 = vmatpush3.bf16.msra.mxu1 %v3042_v23  ;;  %2704 = vmatprep.subr.bf16.mxu0 %v3043_v24  ;;  %v43_v8 = vld [vmem:[%s3461_s0 + $0x10] sm:$0xff]  ;;  %v44_v12 = vld [vmem:[%s3461_s0 + $0x18] sm:$0xff]  ;;  %v3086_v19 = vld [vmem:[#allocation2 + $0x280] sm:$0xff]  }
  0x2b   :  { %2726 = vmatprep.subr.bf16.mxu1 %v3044_v25  ;;  %v55_v9 = vld [vmem:[%s3461_s0 + $0x70] sm:$0xff]  ;;  %v56_v13 = vld [vmem:[%s3461_s0 + $0x78] sm:$0xff]  ;;  %v3087_v20 = vld [vmem:[#allocation2 + $0x248] sm:$0xff]  }
  0x2c   :  { %v2462_v10 = vcombine.low %v43_v8, %v55_v9  ;;  %v2463_v11 = vcombine.high %v43_v8, %v55_v9  ;;  %v2464_v14 = vcombine.low %v44_v12, %v56_v13  ;;  %v2465_v15 = vcombine.high %v44_v12, %v56_v13  ;;  %v3088_v21 = vld [vmem:[#allocation2 + $0x2c8] sm:$0xff]   ;;  %v3091_v24 = vld [vmem:[#allocation2 + $0x250] sm:$0xff]   ;;  %v3099_v32 = vld [vmem:[#allocation2 + $0x260] sm:$0xff]  }
  0x2d   :  { %2705 = vmatpush3.bf16.msra.mxu0 %v3045_v26  ;;  %v3089_v22 = vld [vmem:[#allocation2 + $0x208] sm:$0xff]   ;;  %v3092_v25 = vld [vmem:[#allocation2 + $0x2d0] sm:$0xff]   ;;  %v3100_v33 = vld [vmem:[#allocation2 + $0x2e0] sm:$0xff]  }
  0x2e   :  { %2727 = vmatpush3.bf16.msra.mxu1 %v3046_v27  ;;  %2706 = vmatprep.subr.bf16.mxu0 %v3047_v28  ;;  %v3090_v23 = vld [vmem:[#allocation2 + $0x288] sm:$0xff]   ;;  %v3093_v26 = vld [vmem:[#allocation2 + $0x210] sm:$0xff]   ;;  %v3095_v28 = vld [vmem:[#allocation2 + $0x258] sm:$0xff]  }
  0x2f   :  { %2728 = vmatprep.subr.bf16.mxu1 %v3048_v29  ;;  %v3094_v27 = vld [vmem:[#allocation2 + $0x290] sm:$0xff]   ;;  %v3096_v29 = vld [vmem:[#allocation2 + $0x2d8] sm:$0xff]   ;;  %v3101_v34 = vld [vmem:[#allocation2 + $0x220] sm:$0xff]  }
  0x30   :  { %v3103_v36 = vld [vmem:[#allocation2 + $0x268] sm:$0xff]   ;;  %v3131_v8 = vld [vmem:[#allocation2 + $0x360] sm:$0xff]  }
  0x31   :  { %2707 = vmatpush3.bf16.msra.mxu0 %v3049_v30  ;;  %v3097_v30 = vld [vmem:[#allocation2 + $0x218] sm:$0xff]   ;;  %v3104_v37 = vld [vmem:[#allocation2 + $0x2e8] sm:$0xff]   ;;  %v3132_v9 = vld [vmem:[#allocation2 + $0x3e0] sm:$0xff]  }
  0x32   :  { %2729 = vmatpush3.bf16.msra.mxu1 %v3050_v31  ;;  %2736 = vmatprep.subr.bf16.mxu0 %v3051_v40  ;;  %v3098_v31 = vld [vmem:[#allocation2 + $0x298] sm:$0xff]   ;;  %v3106_v39 = vld [vmem:[#allocation2 + $0x2a8] sm:$0xff]   ;;  %v3107_v40 = vld [vmem:[#allocation2 + $0x270] sm:$0xff]  }
  0x33   :  { %2758 = vmatprep.subr.bf16.mxu1 %v3052_v41  ;;  %v3108_v41 = vld [vmem:[#allocation2 + $0x2f0] sm:$0xff]   ;;  %v3135_v12 = vld [vmem:[#allocation2 + $0x368] sm:$0xff]  }
  0x34   :  { %1761 = vmatmul.mubr.bf16.vlgmr.msra.gmra.mrb[0].mxu0 %v2458_v35  ;;  %v3102_v35 = vld [vmem:[#allocation2 + $0x2a0] sm:$0xff]   ;;  %v3136_v13 = vld [vmem:[#allocation2 + $0x3e8] sm:$0xff]  }
  0x35   :  { %1802 = vmatmul.mubr.bf16.vlgmr.msra.gmra.mrb[0].mxu1 %v2460_v38  ;;  %2737 = vmatpush3.bf16.msra.mxu0 %v3053_v42  ;;  %v3105_v38 = vld [vmem:[#allocation2 + $0x228] sm:$0xff]   ;;  %v3109_v42 = vld [vmem:[#allocation2 + $0x230] sm:$0xff]  }
  0x36   :  { %2759 = vmatpush3.bf16.msra.mxu1 %v3054_v43  ;;  %2738 = vmatprep.subr.bf16.mxu0 %v3055_v44  ;;  %v3110_v43 = vld [vmem:[#allocation2 + $0x2b0] sm:$0xff]   ;;  %v3111_v44 = vld [vmem:[#allocation2 + $0x278] sm:$0xff]  }
  0x37   :  { %2760 = vmatprep.subr.bf16.mxu1 %v3056_v45  ;;  %1842 = vmatprep.mubr.bf16.mxu0 %v2463_v11  ;;  %v3112_v45 = vld [vmem:[#allocation2 + $0x2f8] sm:$0xff]   ;;  %v3134_v11 = vld [vmem:[#allocation2 + $0x3a0] sm:$0xff]  }
  0x38   :  { %1883 = vmatprep.mubr.bf16.mxu1 %v2465_v15  ;;  %v3138_v15 = vld [vmem:[#allocation2 + $0x3a8] sm:$0xff]  }
  0x39   :  { %2739 = vmatpush3.bf16.msra.mxu0 %v3057_v46  ;;  %v3113_v46 = vld [vmem:[#allocation2 + $0x238] sm:$0xff]  }
  0x3a   :  { %2761 = vmatpush3.bf16.msra.mxu1 %v3058_v47  ;;  %2740 = vmatprep.subr.bf16.mxu0 %v3059_v48  ;;  %v3114_v47 = vld [vmem:[#allocation2 + $0x2b8] sm:$0xff]   ;;  %v45_v48 = vld [vmem:[%s3461_s0 + $0x20] sm:$0xff] }
  0x3b   :  { %2762 = vmatprep.subr.bf16.mxu1 %v3060_v49  ;;  %v57_v49 = vld [vmem:[%s3461_s0 + $0x80] sm:$0xff] }
  0x3d   :  { %2741 = vmatpush3.bf16.msra.mxu0 %v3061_v50  ;;  %v46_v50 = vld [vmem:[%s3461_s0 + $0x28] sm:$0xff] }
  0x3e   :  { %2763 = vmatpush3.bf16.msra.mxu1 %v3062_v51  ;;  %2742 = vmatprep.subr.bf16.mxu0 %v3063_v52  ;;  %v58_v51 = vld [vmem:[%s3461_s0 + $0x88] sm:$0xff]  ;;  %v2466_v52 = vcombine.low %v45_v48, %v57_v49 }
  0x3f   :  { %2764 = vmatprep.subr.bf16.mxu1 %v3064_v53  ;;  %v2467_v53 = vcombine.high %v45_v48, %v57_v49  ;;  %v3163_v48 = vld [vmem:[#allocation2 + $0x460] sm:$0xff]  }
  0x40   :  { %v3164_v49 = vld [vmem:[#allocation2 + $0x4e0] sm:$0xff]  }
  0x41   :  { %2743 = vmatpush3.bf16.msra.mxu0 %v3065_v54  ;;  %v2468_v54 = vcombine.low %v46_v50, %v58_v51 }
  0x42   :  { %2765 = vmatpush3.bf16.msra.mxu1 %v3066_v55  ;;  %2744 = vmatprep.subr.bf16.mxu0 %v3067_v56  ;;  %v2469_v55 = vcombine.high %v46_v50, %v58_v51  ;;  %v3115_v56 = vld [vmem:[#allocation2 + $0x340] sm:$0xff]  }
  0x43   :  { %2766 = vmatprep.subr.bf16.mxu1 %v3068_v57  ;;  %v3116_v57 = vld [vmem:[#allocation2 + $0x3c0] sm:$0xff]  }
  0x44   :  { %v3165_v50 = vld [vmem:[#allocation2 + $0x420] sm:$0xff]  }
  0x45   :  { %2745 = vmatpush3.bf16.msra.mxu0 %v3069_v58  ;;  %v3117_v58 = vld [vmem:[#allocation2 + $0x300] sm:$0xff]  }
  0x46   :  { %2767 = vmatpush3.bf16.msra.mxu1 %v3070_v59  ;;  %2746 = vmatprep.subr.bf16.mxu0 %v3071_v60  ;;  %v3118_v59 = vld [vmem:[#allocation2 + $0x380] sm:$0xff]   ;;  %v3119_v60 = vld [vmem:[#allocation2 + $0x348] sm:$0xff]  }
  0x47   :  { %2768 = vmatprep.subr.bf16.mxu1 %v3072_v61  ;;  %v3120_v61 = vld [vmem:[#allocation2 + $0x3c8] sm:$0xff]   ;;  %v3166_v51 = vld [vmem:[#allocation2 + $0x4a0] sm:$0xff]  }
  0x49   :  { %2747 = vmatpush3.bf16.msra.mxu0 %v3073_v62  ;;  %v3121_v62 = vld [vmem:[#allocation2 + $0x308] sm:$0xff]  }
  0x4a   :  { %2769 = vmatpush3.bf16.msra.mxu1 %v3074_v63  ;;  %2748 = vmatprep.subr.bf16.mxu0 %v3075_v0  ;;  %v3122_v63 = vld [vmem:[#allocation2 + $0x388] sm:$0xff]   ;;  %v3123_v0 = vld [vmem:[#allocation2 + $0x350] sm:$0xff]  }
  0x4b   :  { %2770 = vmatprep.subr.bf16.mxu1 %v3076_v1  ;;  %v3124_v1 = vld [vmem:[#allocation2 + $0x3d0] sm:$0xff]  }
  0x4d   :  { %2749 = vmatpush3.bf16.msra.mxu0 %v3077_v2  ;;  %v3125_v2 = vld [vmem:[#allocation2 + $0x310] sm:$0xff]  }
  0x4e   :  { %2771 = vmatpush3.bf16.msra.mxu1 %v3078_v3  ;;  %2750 = vmatprep.subr.bf16.mxu0 %v3079_v4  ;;  %v3126_v3 = vld [vmem:[#allocation2 + $0x390] sm:$0xff]   ;;  %v3127_v4 = vld [vmem:[#allocation2 + $0x358] sm:$0xff]  }
  0x4f   :  { %2772 = vmatprep.subr.bf16.mxu1 %v3080_v5  ;;  %v3128_v5 = vld [vmem:[#allocation2 + $0x3d8] sm:$0xff]  }
  0x51   :  { %2751 = vmatpush3.bf16.msra.mxu0 %v3081_v6  ;;  %v3129_v6 = vld [vmem:[#allocation2 + $0x318] sm:$0xff]  }
  0x52   :  { %2773 = vmatpush3.bf16.msra.mxu1 %v3082_v7  ;;  %2780 = vmatprep.subr.bf16.mxu0 %v3083_v16  ;;  %v3130_v7 = vld [vmem:[#allocation2 + $0x398] sm:$0xff]   ;;  %v3139_v16 = vld [vmem:[#allocation2 + $0x370] sm:$0xff]  }
  0x53   :  { %2802 = vmatprep.subr.bf16.mxu1 %v3084_v17  ;;  %v3140_v17 = vld [vmem:[#allocation2 + $0x3f0] sm:$0xff]  }
  0x54   :  { %1843 = vmatmul.mubr.bf16.vlgmr.msra.gmra.mrb[4].mxu0 %v2462_v10  ;;  %v3133_v10 = vld [vmem:[#allocation2 + $0x320] sm:$0xff]  }
  0x55   :  { %1884 = vmatmul.mubr.bf16.vlgmr.msra.gmra.mrb[4].mxu1 %v2464_v14  ;;  %2781 = vmatpush3.bf16.msra.mxu0 %v3085_v18  ;;  %v3137_v14 = vld [vmem:[#allocation2 + $0x328] sm:$0xff]   ;;  %v3141_v18 = vld [vmem:[#allocation2 + $0x330] sm:$0xff]  }
  0x56   :  { %2803 = vmatpush3.bf16.msra.mxu1 %v3086_v19  ;;  %2782 = vmatprep.subr.bf16.mxu0 %v3087_v20  ;;  %v3142_v19 = vld [vmem:[#allocation2 + $0x3b0] sm:$0xff]   ;;  %v3143_v20 = vld [vmem:[#allocation2 + $0x378] sm:$0xff]  }
  0x57   :  { %2804 = vmatprep.subr.bf16.mxu1 %v3088_v21  ;;  %1924 = vmatprep.mubr.bf16.mxu0 %v2467_v53  ;;  %v3144_v21 = vld [vmem:[#allocation2 + $0x3f8] sm:$0xff]   ;;  %v3168_v53 = vld [vmem:[#allocation2 + $0x4e8] sm:$0xff]  }
  0x58   :  { %1965 = vmatprep.mubr.bf16.mxu1 %v2469_v55  ;;  %v3170_v55 = vld [vmem:[#allocation2 + $0x4a8] sm:$0xff]  }
  0x59   :  { %2783 = vmatpush3.bf16.msra.mxu0 %v3089_v22  ;;  %v3145_v22 = vld [vmem:[#allocation2 + $0x338] sm:$0xff]  }
  0x5a   :  { %2805 = vmatpush3.bf16.msra.mxu1 %v3090_v23  ;;  %2784 = vmatprep.subr.bf16.mxu0 %v3091_v24  ;;  %v3146_v23 = vld [vmem:[#allocation2 + $0x3b8] sm:$0xff]   ;;  %v47_v24 = vld [vmem:[%s3461_s0 + $0x30] sm:$0xff] }
  0x5b   :  { %2806 = vmatprep.subr.bf16.mxu1 %v3092_v25  ;;  %v59_v25 = vld [vmem:[%s3461_s0 + $0x90] sm:$0xff] }
  0x5d   :  { %2785 = vmatpush3.bf16.msra.mxu0 %v3093_v26  ;;  %v48_v26 = vld [vmem:[%s3461_s0 + $0x38] sm:$0xff] }
  0x5e   :  { %2807 = vmatpush3.bf16.msra.mxu1 %v3094_v27  ;;  %2786 = vmatprep.subr.bf16.mxu0 %v3095_v28  ;;  %v2470_v27 = vcombine.low %v47_v24, %v59_v25  ;;  %v2471_v28 = vcombine.high %v47_v24, %v59_v25  ;;  %v3195_v24 = vld [vmem:[#allocation2 + $0x560] sm:$0xff]  }
  0x5f   :  { %2808 = vmatprep.subr.bf16.mxu1 %v3096_v29  ;;  %v60_v29 = vld [vmem:[%s3461_s0 + $0x98] sm:$0xff]  ;;  %v3196_v25 = vld [vmem:[#allocation2 + $0x5e0] sm:$0xff]  }
  0x61   :  { %2787 = vmatpush3.bf16.msra.mxu0 %v3097_v30  ;;  %v2472_v30 = vcombine.low %v48_v26, %v60_v29 }
  0x62   :  { %2809 = vmatpush3.bf16.msra.mxu1 %v3098_v31  ;;  %2788 = vmatprep.subr.bf16.mxu0 %v3099_v32  ;;  %v2473_v31 = vcombine.high %v48_v26, %v60_v29  ;;  %v3147_v32 = vld [vmem:[#allocation2 + $0x440] sm:$0xff]   ;;  %v3200_v29 = vld [vmem:[#allocation2 + $0x5e8] sm:$0xff]  }
  0x63   :  { %2810 = vmatprep.subr.bf16.mxu1 %v3100_v33  ;;  %v3148_v33 = vld [vmem:[#allocation2 + $0x4c0] sm:$0xff]  }
  0x64   :  { %v3197_v26 = vld [vmem:[#allocation2 + $0x520] sm:$0xff]  }
  0x65   :  { %2789 = vmatpush3.bf16.msra.mxu0 %v3101_v34  ;;  %v3149_v34 = vld [vmem:[#allocation2 + $0x400] sm:$0xff]  }
  0x66   :  { %2811 = vmatpush3.bf16.msra.mxu1 %v3102_v35  ;;  %2790 = vmatprep.subr.bf16.mxu0 %v3103_v36  ;;  %v3150_v35 = vld [vmem:[#allocation2 + $0x480] sm:$0xff]   ;;  %v3151_v36 = vld [vmem:[#allocation2 + $0x448] sm:$0xff]  }
  0x67   :  { %2812 = vmatprep.subr.bf16.mxu1 %v3104_v37  ;;  %v3152_v37 = vld [vmem:[#allocation2 + $0x4c8] sm:$0xff]  }
  0x69   :  { %2791 = vmatpush3.bf16.msra.mxu0 %v3105_v38  ;;  %v3153_v38 = vld [vmem:[#allocation2 + $0x408] sm:$0xff]  }
  0x6a   :  { %2813 = vmatpush3.bf16.msra.mxu1 %v3106_v39  ;;  %2792 = vmatprep.subr.bf16.mxu0 %v3107_v40  ;;  %v3154_v39 = vld [vmem:[#allocation2 + $0x488] sm:$0xff]   ;;  %v3155_v40 = vld [vmem:[#allocation2 + $0x450] sm:$0xff]  }
  0x6b   :  { %2814 = vmatprep.subr.bf16.mxu1 %v3108_v41  ;;  %v3156_v41 = vld [vmem:[#allocation2 + $0x4d0] sm:$0xff]  }
  0x6d   :  { %2793 = vmatpush3.bf16.msra.mxu0 %v3109_v42  ;;  %v3157_v42 = vld [vmem:[#allocation2 + $0x410] sm:$0xff]  }
  0x6e   :  { %2815 = vmatpush3.bf16.msra.mxu1 %v3110_v43  ;;  %2794 = vmatprep.subr.bf16.mxu0 %v3111_v44  ;;  %v3158_v43 = vld [vmem:[#allocation2 + $0x490] sm:$0xff]   ;;  %v3159_v44 = vld [vmem:[#allocation2 + $0x458] sm:$0xff]  }
  0x6f   :  { %2816 = vmatprep.subr.bf16.mxu1 %v3112_v45  ;;  %v3160_v45 = vld [vmem:[#allocation2 + $0x4d8] sm:$0xff]  }
  0x71   :  { %2795 = vmatpush3.bf16.msra.mxu0 %v3113_v46  ;;  %v3161_v46 = vld [vmem:[#allocation2 + $0x418] sm:$0xff]  }
  0x72   :  { %2817 = vmatpush3.bf16.msra.mxu1 %v3114_v47  ;;  %2824 = vmatprep.subr.bf16.mxu0 %v3115_v56  ;;  %v3162_v47 = vld [vmem:[#allocation2 + $0x498] sm:$0xff]   ;;  %v3171_v56 = vld [vmem:[#allocation2 + $0x470] sm:$0xff]  }
  0x73   :  { %2846 = vmatprep.subr.bf16.mxu1 %v3116_v57  ;;  %v3172_v57 = vld [vmem:[#allocation2 + $0x4f0] sm:$0xff]  }
  0x74   :  { %1925 = vmatmul.mubr.bf16.vlgmr.msra.gmra.mrb[8].mxu0 %v2466_v52  ;;  %v3167_v52 = vld [vmem:[#allocation2 + $0x468] sm:$0xff]  }
  0x75   :  { %1966 = vmatmul.mubr.bf16.vlgmr.msra.gmra.mrb[8].mxu1 %v2468_v54  ;;  %2825 = vmatpush3.bf16.msra.mxu0 %v3117_v58  ;;  %v3169_v54 = vld [vmem:[#allocation2 + $0x428] sm:$0xff]   ;;  %v3173_v58 = vld [vmem:[#allocation2 + $0x430] sm:$0xff]  }
  0x76   :  { %2847 = vmatpush3.bf16.msra.mxu1 %v3118_v59  ;;  %2826 = vmatprep.subr.bf16.mxu0 %v3119_v60  ;;  %v3174_v59 = vld [vmem:[#allocation2 + $0x4b0] sm:$0xff]   ;;  %v3175_v60 = vld [vmem:[#allocation2 + $0x478] sm:$0xff]  }
  0x77   :  { %2848 = vmatprep.subr.bf16.mxu1 %v3120_v61  ;;  %2006 = vmatprep.mubr.bf16.mxu0 %v2471_v28  ;;  %v3176_v61 = vld [vmem:[#allocation2 + $0x4f8] sm:$0xff]   ;;  %v3199_v28 = vld [vmem:[#allocation2 + $0x568] sm:$0xff]  }
  0x78   :  { %2047 = vmatprep.mubr.bf16.mxu1 %v2473_v31  ;;  %v3202_v31 = vld [vmem:[#allocation2 + $0x5a8] sm:$0xff]  }
  0x79   :  { %2827 = vmatpush3.bf16.msra.mxu0 %v3121_v62  ;;  %v3177_v62 = vld [vmem:[#allocation2 + $0x438] sm:$0xff]  }
  0x7a   :  { %2849 = vmatpush3.bf16.msra.mxu1 %v3122_v63  ;;  %2828 = vmatprep.subr.bf16.mxu0 %v3123_v0  ;;  %v3178_v63 = vld [vmem:[#allocation2 + $0x4b8] sm:$0xff]   ;;  %v49_v0 = vld [vmem:[%s3461_s0 + $0x40] sm:$0xff] }
  0x7b   :  { %2850 = vmatprep.subr.bf16.mxu1 %v3124_v1  ;;  %v61_v1 = vld [vmem:[%s3461_s0 + $0xa0] sm:$0xff] }
  0x7d   :  { %2829 = vmatpush3.bf16.msra.mxu0 %v3125_v2  ;;  %v2474_v2 = vcombine.low %v49_v0, %v61_v1 }
  0x7e   :  { %2851 = vmatpush3.bf16.msra.mxu1 %v3126_v3  ;;  %2830 = vmatprep.subr.bf16.mxu0 %v3127_v4  ;;  %v2475_v3 = vcombine.high %v49_v0, %v61_v1  ;;  %v50_v4 = vld [vmem:[%s3461_s0 + $0x48] sm:$0xff]  ;;  %v3211_v1 = vld [vmem:[%s3464_s3] sm:$0xff]  }
  0x7f   :  { %2852 = vmatprep.subr.bf16.mxu1 %v3128_v5  ;;  %v62_v5 = vld [vmem:[%s3461_s0 + $0xa8] sm:$0xff] }
  0x81   :  { %2831 = vmatpush3.bf16.msra.mxu0 %v3129_v6  ;;  %v2476_v6 = vcombine.low %v50_v4, %v62_v5 }
  0x82   :  { %2853 = vmatpush3.bf16.msra.mxu1 %v3130_v7  ;;  %2832 = vmatprep.subr.bf16.mxu0 %v3131_v8  ;;  %v2477_v7 = vcombine.high %v50_v4, %v62_v5  ;;  %v3179_v8 = vld [vmem:[#allocation2 + $0x540] sm:$0xff]   ;;  %v3213_v4 = vld [vmem:[%s3464_s3 + $0x10] sm:$0xff]   ;;  %v3214_v5 = vld [vmem:[%s3464_s3 + $0x18] sm:$0xff]  }
  0x83   :  { %2854 = vmatprep.subr.bf16.mxu1 %v3132_v9  ;;  %v3180_v9 = vld [vmem:[#allocation2 + $0x5c0] sm:$0xff]  }
  0x85   :  { %2833 = vmatpush3.bf16.msra.mxu0 %v3133_v10  ;;  %v3181_v10 = vld [vmem:[#allocation2 + $0x500] sm:$0xff]  }
  0x86   :  { %2855 = vmatpush3.bf16.msra.mxu1 %v3134_v11  ;;  %2834 = vmatprep.subr.bf16.mxu0 %v3135_v12  ;;  %v3182_v11 = vld [vmem:[#allocation2 + $0x580] sm:$0xff]   ;;  %v3183_v12 = vld [vmem:[#allocation2 + $0x548] sm:$0xff]  }
  0x87   :  { %2856 = vmatprep.subr.bf16.mxu1 %v3136_v13  ;;  %v3184_v13 = vld [vmem:[#allocation2 + $0x5c8] sm:$0xff]  }
  0x89   :  { %2835 = vmatpush3.bf16.msra.mxu0 %v3137_v14  ;;  %v3185_v14 = vld [vmem:[#allocation2 + $0x508] sm:$0xff]  }
  0x8a   :  { %2857 = vmatpush3.bf16.msra.mxu1 %v3138_v15  ;;  %2836 = vmatprep.subr.bf16.mxu0 %v3139_v16  ;;  %v3186_v15 = vld [vmem:[#allocation2 + $0x588] sm:$0xff]   ;;  %v3187_v16 = vld [vmem:[#allocation2 + $0x550] sm:$0xff]  }
  0x8b   :  { %2858 = vmatprep.subr.bf16.mxu1 %v3140_v17  ;;  %v3188_v17 = vld [vmem:[#allocation2 + $0x5d0] sm:$0xff]  }
  0x8d   :  { %2837 = vmatpush3.bf16.msra.mxu0 %v3141_v18  ;;  %v3189_v18 = vld [vmem:[#allocation2 + $0x510] sm:$0xff]  }
  0x8e   :  { %2859 = vmatpush3.bf16.msra.mxu1 %v3142_v19  ;;  %2838 = vmatprep.subr.bf16.mxu0 %v3143_v20  ;;  %v3190_v19 = vld [vmem:[#allocation2 + $0x590] sm:$0xff]   ;;  %v3191_v20 = vld [vmem:[#allocation2 + $0x558] sm:$0xff]  }
  0x8f   :  { %2860 = vmatprep.subr.bf16.mxu1 %v3144_v21  ;;  %v3192_v21 = vld [vmem:[#allocation2 + $0x5d8] sm:$0xff]  }
  0x91   :  { %2839 = vmatpush3.bf16.msra.mxu0 %v3145_v22  ;;  %v3193_v22 = vld [vmem:[#allocation2 + $0x518] sm:$0xff]  }
  0x92   :  { %2861 = vmatpush3.bf16.msra.mxu1 %v3146_v23  ;;  %2868 = vmatprep.subr.bf16.mxu0 %v3147_v32  ;;  %v3194_v23 = vld [vmem:[#allocation2 + $0x598] sm:$0xff]   ;;  %v3203_v32 = vld [vmem:[#allocation2 + $0x570] sm:$0xff]  }
  0x93   :  { %2890 = vmatprep.subr.bf16.mxu1 %v3148_v33  ;;  %v3204_v33 = vld [vmem:[#allocation2 + $0x5f0] sm:$0xff]  }
  0x94   :  { %2007 = vmatmul.mubr.bf16.vlgmr.msra.gmra.mrb[12].mxu0 %v2470_v27  ;;  %v3198_v27 = vld [vmem:[#allocation2 + $0x5a0] sm:$0xff]  }
  0x95   :  { %2048 = vmatmul.mubr.bf16.vlgmr.msra.gmra.mrb[12].mxu1 %v2472_v30  ;;  %2869 = vmatpush3.bf16.msra.mxu0 %v3149_v34  ;;  %v3201_v30 = vld [vmem:[#allocation2 + $0x528] sm:$0xff]   ;;  %v3205_v34 = vld [vmem:[#allocation2 + $0x530] sm:$0xff]  }
  0x96   :  { %2891 = vmatpush3.bf16.msra.mxu1 %v3150_v35  ;;  %2870 = vmatprep.subr.bf16.mxu0 %v3151_v36  ;;  %v3206_v35 = vld [vmem:[#allocation2 + $0x5b0] sm:$0xff]   ;;  %v3207_v36 = vld [vmem:[#allocation2 + $0x578] sm:$0xff]  }
  0x97   :  { %2892 = vmatprep.subr.bf16.mxu1 %v3152_v37  ;;  %2088 = vmatprep.mubr.bf16.mxu0 %v2475_v3  ;;  %v3208_v37 = vld [vmem:[#allocation2 + $0x5f8] sm:$0xff]   ;;  %v3212_v3 = vld [vmem:[%s3464_s3 + $0x8] sm:$0xff]  }
  0x98   :  { %2129 = vmatprep.mubr.bf16.mxu1 %v2477_v7 }
  0x99   :  { %2871 = vmatpush3.bf16.msra.mxu0 %v3153_v38  ;;  %v3209_v38 = vld [vmem:[#allocation2 + $0x538] sm:$0xff]  }
  0x9a   :  { %2893 = vmatpush3.bf16.msra.mxu1 %v3154_v39  ;;  %2872 = vmatprep.subr.bf16.mxu0 %v3155_v40  ;;  %v3210_v39 = vld [vmem:[#allocation2 + $0x5b8] sm:$0xff]   ;;  %v51_v40 = vld [vmem:[%s3461_s0 + $0x50] sm:$0xff] }
  0x9b   :  { %2894 = vmatprep.subr.bf16.mxu1 %v3156_v41  ;;  %v63_v41 = vld [vmem:[%s3461_s0 + $0xb0] sm:$0xff] }
  0x9d   :  { %2873 = vmatpush3.bf16.msra.mxu0 %v3157_v42  ;;  %v52_v42 = vld [vmem:[%s3461_s0 + $0x58] sm:$0xff] }
  0x9e   :  { %2895 = vmatpush3.bf16.msra.mxu1 %v3158_v43  ;;  %2874 = vmatprep.subr.bf16.mxu0 %v3159_v44  ;;  %v64_v43 = vld [vmem:[%s3461_s0 + $0xb8] sm:$0xff]  ;;  %v2478_v44 = vcombine.low %v51_v40, %v63_v41 }
  0x9f   :  { %2896 = vmatprep.subr.bf16.mxu1 %v3160_v45  ;;  %v2479_v45 = vcombine.high %v51_v40, %v63_v41 }
  0xa1   :  { %2875 = vmatpush3.bf16.msra.mxu0 %v3161_v46  ;;  %v2480_v46 = vcombine.low %v52_v42, %v64_v43 }
  0xa2   :  { %2897 = vmatpush3.bf16.msra.mxu1 %v3162_v47  ;;  %2876 = vmatprep.subr.bf16.mxu0 %v3163_v48  ;;  %v2481_v47 = vcombine.high %v52_v42, %v64_v43 }
  0xa3   :  { %2898 = vmatprep.subr.bf16.mxu1 %v3164_v49 }
  0xa5   :  { %2877 = vmatpush3.bf16.msra.mxu0 %v3165_v50  ;;  %v2457_v50 = vld [vmem:[%s3463_s2] ss:$0 sm:$0xff] }
  0xa6   :  { %2899 = vmatpush3.bf16.msra.mxu1 %v3166_v51  ;;  %2878 = vmatprep.subr.bf16.mxu0 %v3167_v52 }
  0xa7   :  { %2900 = vmatprep.subr.bf16.mxu1 %v3168_v53 }
  0xa9   :  { %2879 = vmatpush3.bf16.msra.mxu0 %v3169_v54 }
  0xaa   :  { %2901 = vmatpush3.bf16.msra.mxu1 %v3170_v55  ;;  %2880 = vmatprep.subr.bf16.mxu0 %v3171_v56 }
  0xab   :  { %2902 = vmatprep.subr.bf16.mxu1 %v3172_v57 }
  0xad   :  { %2881 = vmatpush3.bf16.msra.mxu0 %v3173_v58 }
  0xae   :  { %2903 = vmatpush3.bf16.msra.mxu1 %v3174_v59  ;;  %2882 = vmatprep.subr.bf16.mxu0 %v3175_v60 }
  0xaf   :  { %2904 = vmatprep.subr.bf16.mxu1 %v3176_v61 }
  0xb1   :  { %2883 = vmatpush3.bf16.msra.mxu0 %v3177_v62 }
  0xb2   :  { %2905 = vmatpush3.bf16.msra.mxu1 %v3178_v63  ;;  %2912 = vmatprep.subr.bf16.mxu0 %v3179_v8 }
  0xb3   :  { %2934 = vmatprep.subr.bf16.mxu1 %v3180_v9 }
  0xb4   :  { %2089 = vmatmul.mubr.bf16.vlgmr.msra.gmra.mrb[16].mxu0 %v2474_v2  ;;  %v3254_v2 = vmov 0.0  }
  0xb5   :  { %2130 = vmatmul.mubr.bf16.vlgmr.msra.gmra.mrb[16].mxu1 %v2476_v6  ;;  %2913 = vmatpush3.bf16.msra.mxu0 %v3181_v10  ;;  %v3215_v6 = vld [vmem:[%s3464_s3 + $0x20] sm:$0xff]  }
  0xb6   :  { %2935 = vmatpush3.bf16.msra.mxu1 %v3182_v11  ;;  %2914 = vmatprep.subr.bf16.mxu0 %v3183_v12 }
  0xb7   :  { %2936 = vmatprep.subr.bf16.mxu1 %v3184_v13  ;;  %2170 = vmatprep.mubr.bf16.mxu0 %v2479_v45 }
  0xb8   :  { %2211 = vmatprep.mubr.bf16.mxu1 %v2481_v47 }
  0xb9   :  { %2915 = vmatpush3.bf16.msra.mxu0 %v3185_v14 }
  0xba   :  { %2937 = vmatpush3.bf16.msra.mxu1 %v3186_v15  ;;  %2916 = vmatprep.subr.bf16.mxu0 %v3187_v16 }
  0xbb   :  { %2938 = vmatprep.subr.bf16.mxu1 %v3188_v17 }
  0xbd   :  { %2917 = vmatpush3.bf16.msra.mxu0 %v3189_v18 }
  0xbe   :  { %2939 = vmatpush3.bf16.msra.mxu1 %v3190_v19  ;;  %2918 = vmatprep.subr.bf16.mxu0 %v3191_v20 }
  0xbf   :  { %2940 = vmatprep.subr.bf16.mxu1 %v3192_v21 }
  0xc1   :  { %2919 = vmatpush3.bf16.msra.mxu0 %v3193_v22  ;;  %v3216_v22 = vld [vmem:[%s3464_s3 + $0x28] sm:$0xff]  }
  0xc2   :  { %2941 = vmatpush3.bf16.msra.mxu1 %v3194_v23  ;;  %2920 = vmatprep.subr.bf16.mxu0 %v3195_v24  ;;  %v3217_v24 = vld [vmem:[%s3464_s3 + $0x30] sm:$0xff]  }
  0xc3   :  { %2942 = vmatprep.subr.bf16.mxu1 %v3196_v25  ;;  %v3218_v25 = vld [vmem:[%s3464_s3 + $0x38] sm:$0xff]  }
  0xc5   :  { %2921 = vmatpush3.bf16.msra.mxu0 %v3197_v26  ;;  %v3219_v26 = vld [vmem:[%s3466_s5] sm:$0xff]  }
  0xc6   :  { %2943 = vmatpush3.bf16.msra.mxu1 %v3198_v27  ;;  %2922 = vmatprep.subr.bf16.mxu0 %v3199_v28  ;;  %v3220_v27 = vld [vmem:[%s3466_s5 + $0x8] sm:$0xff]   ;;  %v3221_v28 = vld [vmem:[%s3466_s5 + $0x10] sm:$0xff]  }
  0xc7   :  { %2944 = vmatprep.subr.bf16.mxu1 %v3200_v29  ;;  %v3222_v29 = vld [vmem:[%s3466_s5 + $0x18] sm:$0xff]  }
  0xc9   :  { %2923 = vmatpush3.bf16.msra.mxu0 %v3201_v30 }
  0xca   :  { %2945 = vmatpush3.bf16.msra.mxu1 %v3202_v31  ;;  %2924 = vmatprep.subr.bf16.mxu0 %v3203_v32  ;;  %v3223_v32 = vld [vmem:[%s3466_s5 + $0x20] sm:$0xff]  }
  0xcb   :  { %2946 = vmatprep.subr.bf16.mxu1 %v3204_v33 }
  0xcd   :  { %2925 = vmatpush3.bf16.msra.mxu0 %v3205_v34 }
  0xce   :  { %2947 = vmatpush3.bf16.msra.mxu1 %v3206_v35  ;;  %2926 = vmatprep.subr.bf16.mxu0 %v3207_v36 }
  0xcf   :  { %2948 = vmatprep.subr.bf16.mxu1 %v3208_v37 }
  0xd1   :  { %2927 = vmatpush3.bf16.msra.mxu0 %v3209_v38 }
  0xd2   :  { %2949 = vmatpush3.bf16.msra.mxu1 %v3210_v39  ;;  %2974 = vmatprep.subr.bf16.mxu0 %v3254_v2 }
  0xd3   :  { %2994 = vmatprep.subr.bf16.mxu1 %v3254_v2 }
  0xd4   :  { %2171 = vmatmul.mubr.bf16.vlgmr.msra.gmra.mrb[20].mxu0 %v2478_v44  ;;  %v3224_v44 = vld [vmem:[%s3466_s5 + $0x28] sm:$0xff]  }
  0xd5   :  { %2212 = vmatmul.mubr.bf16.vlgmr.msra.gmra.mrb[20].mxu1 %v2480_v46  ;;  %2975 = vmatpush3.bf16.msra.mxu0 %v3211_v1 }
  0xd6   :  { %2976 = vmatprep.subr.bf16.mxu0 %v3254_v2  ;;  %2990 = vmatprep.mubr.msk.bf16.mxu0 %vm3255_vm0, %v3254_v2 }
  0xd7   :  { %3010 = vmatprep.mubr.msk.bf16.mxu1 %vm3255_vm0, %v3254_v2  ;;  %2995 = vmatpush3.bf16.msra.mxu1 %v3219_v26 }
  0xd8   :  { %2996 = vmatprep.subr.bf16.mxu1 %v3254_v2 }
  0xd9   :  { %2977 = vmatpush3.bf16.msra.mxu0 %v3212_v3 }
  0xda   :  { %2978 = vmatprep.subr.bf16.mxu0 %v3254_v2 }
  0xdb   :  { %2997 = vmatpush3.bf16.msra.mxu1 %v3220_v27 }
  0xdc   :  { %2998 = vmatprep.subr.bf16.mxu1 %v3254_v2 }
  0xdd   :  { %2979 = vmatpush3.bf16.msra.mxu0 %v3213_v4 }
  0xde   :  { %2980 = vmatprep.subr.bf16.mxu0 %v3254_v2 }
  0xdf   :  { %2999 = vmatpush3.bf16.msra.mxu1 %v3221_v28 }
  0xe0   :  { %3000 = vmatprep.subr.bf16.mxu1 %v3254_v2 }
  0xe1   :  { %2981 = vmatpush3.bf16.msra.mxu0 %v3214_v5 }
  0xe2   :  { %2982 = vmatprep.subr.bf16.mxu0 %v3254_v2 }
  0xe3   :  { %3001 = vmatpush3.bf16.msra.mxu1 %v3222_v29 }
  0xe4   :  { %3002 = vmatprep.subr.bf16.mxu1 %v3254_v2 }
  0xe5   :  { %2983 = vmatpush3.bf16.msra.mxu0 %v3215_v6 }
  0xe6   :  { %2984 = vmatprep.subr.bf16.mxu0 %v3254_v2 }
  0xe7   :  { %3003 = vmatpush3.bf16.msra.mxu1 %v3223_v32 }
  0xe8   :  { %3004 = vmatprep.subr.bf16.mxu1 %v3254_v2 }
  0xe9   :  { %2985 = vmatpush3.bf16.msra.mxu0 %v3216_v22 }
  0xea   :  { %2986 = vmatprep.subr.bf16.mxu0 %v3254_v2 }
  0xeb   :  { %3005 = vmatpush3.bf16.msra.mxu1 %v3224_v44 }
  0xec   :  { %3006 = vmatprep.subr.bf16.mxu1 %v3254_v2 }
  0xed   :  { %2987 = vmatpush3.bf16.msra.mxu0 %v3217_v24 }
  0xee   :  { %2988 = vmatprep.subr.bf16.mxu0 %v3254_v2 }
  0xf1   :  { %2989 = vmatpush3.bf16.msra.mxu0 %v3218_v25 }
 0x107   :  { %v2708_v48 = vpop.f32.mrb[0].mxu0 }
 0x108   :  { %v2730_v49 = vpop.f32.mrb[0].mxu1  ;;  %v2709_v51 = vpop.f32.mrb[1].mxu0 }
 0x109   :  { %v2710_v52 = vadd.f32 %v2709_v51, %v2708_v48  ;;  %v2731_v53 = vpop.f32.mrb[1].mxu1  ;;  %v2711_v54 = vpop.f32.mrb[2].mxu0 }
 0x10a   :  { %v2732_v55 = vadd.f32 %v2731_v53, %v2730_v49  ;;  %v2733_v56 = vpop.f32.mrb[2].mxu1  ;;  %v2712_v57 = vpop.f32.mrb[3].mxu0 }
 0x10b   :  { %v1763_v58 = vadd.f32 %v2710_v52, %v2457_v50  ;;  %v2713_v59 = vadd.f32 %v2712_v57, %v2711_v54  ;;  %v2734_v60 = vpop.f32.mrb[3].mxu1 }
 0x10c   :  { %v2735_v61 = vadd.f32 %v2734_v60, %v2733_v56 }
 0x10d   :  { %v1804_v62 = vadd.f32 %v2732_v55, %v1763_v58  ;;  %v1766_v63 = vadd.f32 %v2713_v59, %v2457_v50 }
 0x10f   :  { %v1807_v0 = vadd.f32 %v2735_v61, %v1766_v63 }
 0x127   :  { %v2752_v7 = vpop.f32.mrb[4].mxu0 }
 0x128   :  { %v2774_v8 = vpop.f32.mrb[4].mxu1  ;;  %v2753_v9 = vpop.f32.mrb[5].mxu0 }
 0x129   :  { %v2754_v10 = vadd.f32 %v2753_v9, %v2752_v7  ;;  %v2775_v11 = vpop.f32.mrb[5].mxu1  ;;  %v2755_v12 = vpop.f32.mrb[6].mxu0 }
 0x12a   :  { %v2776_v13 = vadd.f32 %v2775_v11, %v2774_v8  ;;  %v2777_v14 = vpop.f32.mrb[6].mxu1  ;;  %v2756_v15 = vpop.f32.mrb[7].mxu0 }
 0x12b   :  { %v1845_v16 = vadd.f32 %v2754_v10, %v1804_v62  ;;  %v2757_v17 = vadd.f32 %v2756_v15, %v2755_v12  ;;  %v2778_v18 = vpop.f32.mrb[7].mxu1 }
 0x12c   :  { %v2779_v19 = vadd.f32 %v2778_v18, %v2777_v14 }
 0x12d   :  { %v1886_v20 = vadd.f32 %v2776_v13, %v1845_v16  ;;  %v1848_v21 = vadd.f32 %v2757_v17, %v1807_v0 }
 0x12f   :  { %v1889_v23 = vadd.f32 %v2779_v19, %v1848_v21 }
 0x147   :  { %v2796_v30 = vpop.f32.mrb[8].mxu0 }
 0x148   :  { %v2818_v31 = vpop.f32.mrb[8].mxu1  ;;  %v2797_v33 = vpop.f32.mrb[9].mxu0 }
 0x149   :  { %v2819_v34 = vpop.f32.mrb[9].mxu1  ;;  %v2798_v35 = vadd.f32 %v2797_v33, %v2796_v30  ;;  %v2799_v37 = vpop.f32.mrb[10].mxu0 }
 0x14a   :  { %v2820_v36 = vadd.f32 %v2819_v34, %v2818_v31  ;;  %v2821_v38 = vpop.f32.mrb[10].mxu1  ;;  %v2800_v39 = vpop.f32.mrb[11].mxu0 }
 0x14b   :  { %v2822_v40 = vpop.f32.mrb[11].mxu1  ;;  %v1927_v41 = vadd.f32 %v2798_v35, %v1886_v20  ;;  %v2801_v42 = vadd.f32 %v2800_v39, %v2799_v37  ;;  %v3226_v37 = vld [vmem:[%s3466_s5 + $0x38] sm:$0xff]  }
 0x14c   :  { %v2823_v43 = vadd.f32 %v2822_v40, %v2821_v38  ;;  %v2674_v38 = vld [vmem:[%s3465_s4] ss:$0 sm:$0xff] }
 0x14d   :  { %v1968_v45 = vadd.f32 %v2820_v36, %v1927_v41  ;;  %v1930_v46 = vadd.f32 %v2801_v42, %v1889_v23  ;;  %v3225_v36 = vld [vmem:[%s3466_s5 + $0x30] sm:$0xff]  }
 0x14e   :  { %3007 = vmatpush3.bf16.msra.mxu1 %v3225_v36 }
 0x14f   :  { %v1971_v47 = vadd.f32 %v2823_v43, %v1930_v46  ;;  %3008 = vmatprep.subr.bf16.mxu1 %v3254_v2  ;;  %v2683_v2 = vld [vmem:[%s3467_s6] ss:$0 sm:$0xff] }
 0x152   :  { %3009 = vmatpush3.bf16.msra.mxu1 %v3226_v37 }
 0x167   :  { %v2840_v48 = vpop.f32.mrb[12].mxu0 }
 0x168   :  { %v2862_v49 = vpop.f32.mrb[12].mxu1  ;;  %v2841_v50 = vpop.f32.mrb[13].mxu0 }
 0x169   :  { %v2842_v51 = vadd.f32 %v2841_v50, %v2840_v48  ;;  %v2863_v52 = vpop.f32.mrb[13].mxu1  ;;  %v2843_v53 = vpop.f32.mrb[14].mxu0 }
 0x16a   :  { %v2864_v54 = vadd.f32 %v2863_v52, %v2862_v49  ;;  %v2865_v55 = vpop.f32.mrb[14].mxu1  ;;  %v2844_v56 = vpop.f32.mrb[15].mxu0 }
 0x16b   :  { %v2009_v57 = vadd.f32 %v2842_v51, %v1968_v45  ;;  %v2845_v58 = vadd.f32 %v2844_v56, %v2843_v53  ;;  %v2866_v59 = vpop.f32.mrb[15].mxu1 }
 0x16c   :  { %v2867_v60 = vadd.f32 %v2866_v59, %v2865_v55 }
 0x16d   :  { %v2050_v61 = vadd.f32 %v2864_v54, %v2009_v57  ;;  %v2012_v62 = vadd.f32 %v2845_v58, %v1971_v47 }
 0x16f   :  { %v2053_v63 = vadd.f32 %v2867_v60, %v2012_v62 }
 0x187   :  { %v2884_v0 = vpop.f32.mrb[16].mxu0 }
 0x188   :  { %v2906_v1 = vpop.f32.mrb[16].mxu1  ;;  %v2885_v3 = vpop.f32.mrb[17].mxu0 }
 0x189   :  { %v2886_v4 = vadd.f32 %v2885_v3, %v2884_v0  ;;  %v2907_v5 = vpop.f32.mrb[17].mxu1  ;;  %v2887_v6 = vpop.f32.mrb[18].mxu0 }
 0x18a   :  { %v2908_v7 = vadd.f32 %v2907_v5, %v2906_v1  ;;  %v2909_v8 = vpop.f32.mrb[18].mxu1  ;;  %v2888_v9 = vpop.f32.mrb[19].mxu0 }
 0x18b   :  { %v2091_v10 = vadd.f32 %v2886_v4, %v2050_v61  ;;  %v2889_v11 = vadd.f32 %v2888_v9, %v2887_v6  ;;  %v2910_v12 = vpop.f32.mrb[19].mxu1 }
 0x18c   :  { %v2911_v13 = vadd.f32 %v2910_v12, %v2909_v8 }
 0x18d   :  { %v2132_v14 = vadd.f32 %v2908_v7, %v2091_v10  ;;  %v2094_v15 = vadd.f32 %v2889_v11, %v2053_v63 }
 0x18f   :  { %v2135_v16 = vadd.f32 %v2911_v13, %v2094_v15 }
 0x1a7   :  { %v2928_v17 = vpop.f32.mrb[20].mxu0 }
 0x1a8   :  { %v2950_v18 = vpop.f32.mrb[20].mxu1  ;;  %v2929_v19 = vpop.f32.mrb[21].mxu0 }
 0x1a9   :  { %v2951_v20 = vpop.f32.mrb[21].mxu1  ;;  %v2930_v21 = vadd.f32 %v2929_v19, %v2928_v17  ;;  %v2931_v23 = vpop.f32.mrb[22].mxu0 }
 0x1aa   :  { %v2952_v22 = vadd.f32 %v2951_v20, %v2950_v18  ;;  %v2953_v24 = vpop.f32.mrb[22].mxu1  ;;  %v2932_v25 = vpop.f32.mrb[23].mxu0 }
 0x1ab   :  { %v2954_v26 = vpop.f32.mrb[23].mxu1  ;;  %v2173_v27 = vadd.f32 %v2930_v21, %v2132_v14  ;;  %v2933_v28 = vadd.f32 %v2932_v25, %v2931_v23 }
 0x1ac   :  { %v2955_v29 = vadd.f32 %v2954_v26, %v2953_v24 }
 0x1ad   :  { %v2214_v30 = vadd.f32 %v2952_v22, %v2173_v27  ;;  %v2176_v31 = vadd.f32 %v2933_v28, %v2135_v16 }
 0x1af   :  { %v2217_v32 = vadd.f32 %v2955_v29, %v2176_v31  ;;  %v2220_v33 = vmax.f32 %v2214_v30, 0.0 }
 0x1b1   :  { %v2221_v34 = vmax.f32 %v2217_v32, 0.0 }
 0x1b3   :  { %v2222_v35 = vpack.c.bf16 %v2221_v34, %v2220_v33 }
 0x1b5   :  { %2991 = vmatmul.mubr.bf16.vlgmr.msra.gmra.mrb[24].mxu0 %v2222_v35 }
 0x288   :  { %v2328_v39 = vpop.f32.mrb[24].mxu0 }
 0x289   :  { %v2329_v40 = vadd.f32 %v2674_v38, %v2328_v39  ;;  %v2992_v41 = vpop.f32.mrb[25].mxu0 }
 0x28a   :  { %v2331_v42 = vpop.f32.mrb[26].mxu0 }
 0x28b   :  { %v2332_v43 = vadd.f32 %v2674_v38, %v2331_v42  ;;  %v2993_v44 = vpop.f32.mrb[27].mxu0  ;;  %v2335_v45 = vmax.f32 %v2329_v40, 0.0 }
 0x28d   :  { %v2336_v46 = vmax.f32 %v2332_v43, 0.0 }
 0x28f   :  { %v2337_v47 = vpack.c.bf16 %v2336_v46, %v2335_v45 }
 0x291   :  { %3011 = vmatmul.mubr.bf16.vlgmr.msra.gmra.mrb[24].mxu1 %v2337_v47 }
 0x364   :  { %v2443_v48 = vpop.f32.mrb[24].mxu1 }
 0x365   :  { %v2444_v49 = vadd.f32 %v2683_v2, %v2443_v48  ;;  %v3012_v50 = vpop.f32.mrb[25].mxu1 }
 0x366   :  { %v2446_v51 = vpop.f32.mrb[26].mxu1 }
 0x367   :  { %2450 = vst [vmem:[%s3468_s7] sm:$0xff] %v2444_v49  ;;  %v2447_v52 = vadd.f32 %v2683_v2, %v2446_v51  ;;  %v3013_v53 = vpop.f32.mrb[27].mxu1 }
 0x369   :  { %2451 = vst [vmem:[%s3468_s7 + $0x8] sm:$0xff] %v2447_v52 }
 0x36a   :  { %2456 = vsyncpa [#allocation3], 1 }

</bundles_post_ra>
